<compile_context>
chip_gen: v5e
topology: v5e:2x2
jax: 0.10.0
libtpu: 0.0.40
codegen_flags: <defaults>
</compile_context>

<pallas_src>
import functools

import jax
import jax.numpy as jnp
import numpy as np
from jax.experimental import pallas as pl
from jax.experimental.pallas import tpu as pltpu


def _round_up(a, m):
    return ((a + m - 1) // m) * m


def _vmem_capacity_bytes():
    """Physical VMEM per TensorCore; conservative fallback if query fails."""
    try:
        info = pltpu.get_tpu_info()
        cap = getattr(info, "vmem_capacity_bytes", None)
        if cap:
            return int(cap)
    except Exception:
        pass
    return 64 * 1024 * 1024  # v7x per-TC size: safe lower bound everywhere


def _pick_bt(B, S, Hp, x_itemsize, w_itemsize, out_itemsize, vmem_budget):
    """Largest divisor Bt of B such that:
       * the per-step working set (resident double-buffered weights, double-
         buffered x/out tiles, all kernel temporaries) fits the VMEM budget,
       * the grid keeps >= 2 steps (pipelining overlap + v7x's 2 TensorCores),
       * the (Bt*S, Hp) block stays sublane-aligned (Bt*S % 8 == 0) unless it
         spans the full array.
       Falls back to Bt = 1 if nothing fits (graceful; may still compile)."""

    def step_bytes(bt):
        rows = bt * S
        # Weights + biases, double-buffered by the default pipeline.
        weights = 2 * (Hp * 3 * Hp + Hp * Hp) * w_itemsize + 2 * 4 * Hp * 4
        # x and out tiles, double-buffered.
        io = 2 * rows * Hp * (x_itemsize + out_itemsize)
        # In-kernel temporaries: qkv(f32) + q/k/v(bf16), logits/e/p(f32)+p(bf16),
        # y(f32)+y(bf16)+out(f32).
        tmps = (rows * 3 * Hp * (4 + 2)
                + rows * S * (4 + 4 + 4 + 2)
                + rows * Hp * (4 + 2 + 4))
        return int((weights + io + tmps) * 1.25)

    want_steps = 2 if B >= 2 else 1
    best = 1
    for bt in range(1, B + 1):
        if B % bt:
            continue
        if (B // bt) < want_steps:
            continue
        if (bt * S) % 8 != 0 and bt != B:
            continue
        if step_bytes(bt) <= vmem_budget:
            best = max(best, bt)
    return best


def _attn_kernel(x_ref, wqkv_ref, wo_ref, bqkv_ref, bo_ref, o_ref, *,
                 seq, compute_dtype):
    rows, hp = x_ref.shape          # rows = Bt * seq, hp is 128-aligned
    bt = rows // seq

    # MXU operands in compute_dtype (bf16), accumulation in f32.
    x2d = x_ref[...].astype(compute_dtype)

    # Fused Q/K/V projection: one wide matmul, (rows, 3*hp) f32 accumulator.
    qkv = jnp.dot(x2d, wqkv_ref[...], preferred_element_type=jnp.float32)
    qkv = qkv + bqkv_ref[...]                                   # bias in f32

    # Lane slices at offsets 0, hp, 2*hp (multiples of 128) -> zero-cost views.
    q = qkv[:, 0:hp].astype(compute_dtype).reshape(bt, seq, hp)
    k = qkv[:, hp:2 * hp].astype(compute_dtype).reshape(bt, seq, hp)
    v = qkv[:, 2 * hp:3 * hp].astype(compute_dtype).reshape(bt, seq, hp)

    # logits = q @ k^T per batch element: contract the hidden dim without
    # materializing a transpose of k (batched dot_general).
    logits = jnp.einsum("bqh,bkh->bqk", q, k,
                        preferred_element_type=jnp.float32)     # (bt, S, S) f32

    # Numerically stable softmax over the last dim; denominator via EUP vrcp.
    m = jnp.max(logits, axis=-1, keepdims=True)
    e = jnp.exp(logits - m)
    denom = jnp.sum(e, axis=-1, keepdims=True)
    p = (e * pl.reciprocal(denom, approx=True)).astype(compute_dtype)

    y = jnp.einsum("bqk,bkh->bqh", p, v,
                   preferred_element_type=jnp.float32)          # (bt, S, hp)

    # Output projection, (rows) again folded into the matmul M dim.
    y2d = y.reshape(rows, hp).astype(compute_dtype)
    out = jnp.dot(y2d, wo_ref[...],
                  preferred_element_type=jnp.float32) + bo_ref[...]

    o_ref[...] = out.astype(o_ref.dtype)


def attention_layer(x, params, compute_dtype=jnp.bfloat16):
    """x: (B, S, H). params: torch-layout weights (out,in) and biases (out,)."""
    B, S, H = x.shape
    Hp = _round_up(H, 128)
    pad = Hp - H

    # Wrapper glue: transpose torch (out,in) -> (in,out), zero-pad hidden dim
    # to Hp, fuse Q/K/V weights into one (Hp, 3*Hp) matrix (biases to (1,3*Hp)).
    def w_t_pad(w):
        return jnp.pad(w.T, ((0, pad), (0, pad)))

    def b_pad(b):
        return jnp.pad(b, (0, pad))

    wqkv = jnp.concatenate(
        [w_t_pad(params["wq"]), w_t_pad(params["wk"]), w_t_pad(params["wv"])],
        axis=1).astype(compute_dtype)                            # (Hp, 3Hp) bf16
    wo = w_t_pad(params["wo"]).astype(compute_dtype)             # (Hp, Hp)  bf16
    bqkv = jnp.concatenate(
        [b_pad(params["bq"]), b_pad(params["bk"]), b_pad(params["bv"])]
    ).reshape(1, 3 * Hp).astype(jnp.float32)
    bo = b_pad(params["bo"]).reshape(1, Hp).astype(jnp.float32)

    # Lane-dense 2-D I/O slab: (B*S, Hp); kernel needs no reshape of the tiles.
    x2d = jnp.pad(x, ((0, 0), (0, 0), (0, pad))).reshape(B * S, Hp)

    vmem_cap = _vmem_capacity_bytes()
    vmem_limit = max(32 * 1024 * 1024, (vmem_cap * 3) // 4)

    Bt = _pick_bt(B, S, Hp,
                  x_itemsize=x2d.dtype.itemsize,
                  w_itemsize=jnp.dtype(compute_dtype).itemsize,
                  out_itemsize=x.dtype.itemsize,
                  vmem_budget=vmem_limit)
    rows = Bt * S

    io_spec = pl.BlockSpec((rows, Hp), lambda b: (b, 0))
    # Weights/biases: constant index_map -> fetched once, stay VMEM-resident.
    wqkv_spec = pl.BlockSpec((Hp, 3 * Hp), lambda b: (0, 0))
    wo_spec = pl.BlockSpec((Hp, Hp), lambda b: (0, 0))
    bqkv_spec = pl.BlockSpec((1, 3 * Hp), lambda b: (0, 0))
    bo_spec = pl.BlockSpec((1, Hp), lambda b: (0, 0))

    out2d = pl.pallas_call(
        functools.partial(_attn_kernel, seq=S, compute_dtype=compute_dtype),
        out_shape=jax.ShapeDtypeStruct((B * S, Hp), x.dtype),
        grid_spec=pltpu.PrefetchScalarGridSpec(
            num_scalar_prefetch=0,
            grid=(B // Bt,),
            in_specs=[io_spec, wqkv_spec, wo_spec, bqkv_spec, bo_spec],
            out_specs=io_spec,
        ),
        compiler_params=pltpu.CompilerParams(
            dimension_semantics=("parallel",),
            vmem_limit_bytes=int(vmem_limit),
        ),
    )(x2d, wqkv, wo, bqkv, bo)

    return out2d.reshape(B, S, Hp)[:, :, :H]


def _reference(x, params, compute_dtype=None):
    """Pure-JAX reference mirroring the torch forward.

    With compute_dtype=None it is the exact f32 forward; with
    compute_dtype=jnp.bfloat16 it mirrors the kernel's mixed-precision matmuls
    (bf16 operands, f32 accumulation)."""
    cast = (lambda a: a.astype(compute_dtype)) if compute_dtype is not None else (lambda a: a)

    def linear(a, w, b):
        return jnp.einsum("bsh,oh->bso", cast(a), cast(w),
                          preferred_element_type=jnp.float32) + b

    q = linear(x, params["wq"], params["bq"])
    k = linear(x, params["wk"], params["bk"])
    v = linear(x, params["wv"], params["bv"])
    logits = jnp.einsum("bqh,bkh->bqk", cast(q), cast(k),
                        preferred_element_type=jnp.float32)
    p = jax.nn.softmax(logits, axis=-1)
    y = jnp.einsum("bqk,bkh->bqh", cast(p), cast(v),
                   preferred_element_type=jnp.float32)
    return linear(y, params["wo"], params["bo"]).astype(x.dtype)


if __name__ == "__main__":
    B, S, H = 2, 8, 32
    key = jax.random.PRNGKey(0)
    keys = jax.random.split(key, 9)

    x = jax.random.normal(keys[0], (B, S, H), dtype=jnp.float32)

    # Deterministic parameter init (torch Linear layout: weight (out,in), bias (out,))
    scale = 1.0 / np.sqrt(H)
    params = {
        "wq": jax.random.uniform(keys[1], (H, H), jnp.float32, -scale, scale),
        "bq": jax.random.uniform(keys[2], (H,), jnp.float32, -scale, scale),
        "wk": jax.random.uniform(keys[3], (H, H), jnp.float32, -scale, scale),
        "bk": jax.random.uniform(keys[4], (H,), jnp.float32, -scale, scale),
        "wv": jax.random.uniform(keys[5], (H, H), jnp.float32, -scale, scale),
        "bv": jax.random.uniform(keys[6], (H,), jnp.float32, -scale, scale),
        "wo": jax.random.uniform(keys[7], (H, H), jnp.float32, -scale, scale),
        "bo": jax.random.uniform(keys[8], (H,), jnp.float32, -scale, scale),
    }

    out = attention_layer(x, params)
    out = jax.block_until_ready(out)
    out_np = np.asarray(out)

    # Strict check against a reference that mirrors the kernel's numerics
    # (bf16 MXU operands, f32 accumulation); residual slack covers the approx
    # (EUP) reciprocal in the softmax and accumulation-order differences.
    ref_bf16 = np.asarray(_reference(x, params, compute_dtype=jnp.bfloat16))
    np.testing.assert_allclose(out_np, ref_bf16, rtol=1e-2, atol=1e-2)

    # Coarse sanity bound against the exact f32 torch-mirror forward
    # (tolerance at bf16 level since the kernel runs bf16 matmuls).
    ref_f32 = np.asarray(_reference(x, params))
    np.testing.assert_allclose(out_np, ref_f32, rtol=1e-1, atol=1e-1)

    print("KERNEL_OK")
</pallas_src>

<mosaic_0001>
module attributes {stable_mosaic.version = 11 : i64} {
  func.func @_attn_kernel(%arg0: i32, %arg1: memref<8x128xf32, #tpu.memory_space<vmem>>, %arg2: memref<128x384xbf16, #tpu.memory_space<vmem>>, %arg3: memref<128x128xbf16, #tpu.memory_space<vmem>>, %arg4: memref<1x384xf32, #tpu.memory_space<vmem>>, %arg5: memref<1x128xf32, #tpu.memory_space<vmem>>, %arg6: memref<8x128xf32, #tpu.memory_space<vmem>>) attributes {dimension_semantics = [#tpu.dimension_semantics<parallel>], iteration_bounds = array<i64: 2>, scalar_prefetch = 0 : i64, scratch_operands = 0 : i64, tpu.core_type = #tpu.core_type<tc>, window_params = [{transform_indices = @transform_0, window_bounds = array<i64: 8, 128>}, {pipeline_mode = #tpu.pipeline_mode<synchronous>, transform_indices = @transform_1, window_bounds = array<i64: 128, 384>}, {pipeline_mode = #tpu.pipeline_mode<synchronous>, transform_indices = @transform_2, window_bounds = array<i64: 128, 128>}, {pipeline_mode = #tpu.pipeline_mode<synchronous>, transform_indices = @transform_3, window_bounds = array<i64: 1, 384>}, {pipeline_mode = #tpu.pipeline_mode<synchronous>, transform_indices = @transform_4, window_bounds = array<i64: 1, 128>}, {transform_indices = @transform_5, window_bounds = array<i64: 8, 128>}]} {
    %c0 = arith.constant 0 : index
    %c0_0 = arith.constant 0 : index
    %0 = vector.load %arg1[%c0, %c0_0] : memref<8x128xf32, #tpu.memory_space<vmem>>, vector<8x128xf32>
    %1 = arith.truncf %0 : vector<8x128xf32> to vector<8x128xbf16>
    %c0_1 = arith.constant 0 : index
    %c0_2 = arith.constant 0 : index
    %2 = vector.load %arg2[%c0_1, %c0_2] : memref<128x384xbf16, #tpu.memory_space<vmem>>, vector<128x384xbf16>
    %cst = arith.constant dense<0.000000e+00> : vector<8x384xf32>
    %3 = tpu.matmul %1, %2, %cst {dimension_numbers = #tpu.dot_dimension_numbers<[1], [0], [0], [1], [0, 0, 1, 1], [], []>} : vector<8x128xbf16>, vector<128x384xbf16>, vector<8x384xf32> -> vector<8x384xf32>
    %c0_3 = arith.constant 0 : index
    %c0_4 = arith.constant 0 : index
    %4 = vector.load %arg4[%c0_3, %c0_4] : memref<1x384xf32, #tpu.memory_space<vmem>>, vector<1x384xf32>
    %5 = vector.broadcast %4 : vector<1x384xf32> to vector<8x384xf32>
    %6 = arith.addf %3, %5 : vector<8x384xf32>
    %7 = vector.extract_strided_slice %6 {offsets = [0, 0], sizes = [8, 128], strides = [1, 1]} : vector<8x384xf32> to vector<8x128xf32>
    %8 = arith.truncf %7 : vector<8x128xf32> to vector<8x128xbf16>
    %9 = vector.shape_cast %8 : vector<8x128xbf16> to vector<1x8x128xbf16>
    %10 = vector.extract_strided_slice %6 {offsets = [0, 128], sizes = [8, 128], strides = [1, 1]} : vector<8x384xf32> to vector<8x128xf32>
    %11 = arith.truncf %10 : vector<8x128xf32> to vector<8x128xbf16>
    %12 = vector.shape_cast %11 : vector<8x128xbf16> to vector<1x8x128xbf16>
    %13 = vector.extract_strided_slice %6 {offsets = [0, 256], sizes = [8, 128], strides = [1, 1]} : vector<8x384xf32> to vector<8x128xf32>
    %14 = arith.truncf %13 : vector<8x128xf32> to vector<8x128xbf16>
    %15 = vector.shape_cast %14 : vector<8x128xbf16> to vector<1x8x128xbf16>
    "tpu.trace_start"() <{level = 10 : i32, message = "bqh,bkh->bqk"}> : () -> ()
    %cst_5 = arith.constant dense<0.000000e+00> : vector<1x8x8xf32>
    %16 = tpu.matmul %9, %12, %cst_5 {dimension_numbers = #tpu.dot_dimension_numbers<[2], [2], [1], [1], [0, 0, 0, 1, 1, 1], [0], [0]>} : vector<1x8x128xbf16>, vector<1x8x128xbf16>, vector<1x8x8xf32> -> vector<1x8x8xf32>
    "tpu.trace_stop"() : () -> ()
    %cst_6 = arith.constant dense<0xFF800000> : vector<1x8xf32>
    %17 = vector.multi_reduction <maximumf>, %16, %cst_6 [2] : vector<1x8x8xf32> to vector<1x8xf32>
    %18 = vector.shape_cast %17 : vector<1x8xf32> to vector<1x8x1xf32>
    %19 = vector.broadcast %18 : vector<1x8x1xf32> to vector<1x8x8xf32>
    %20 = arith.subf %16, %19 : vector<1x8x8xf32>
    %21 = math.exp %20 : vector<1x8x8xf32>
    %cst_7 = arith.constant dense<0.000000e+00> : vector<1x8xf32>
    %22 = vector.multi_reduction <add>, %21, %cst_7 [2] : vector<1x8x8xf32> to vector<1x8xf32>
    %23 = vector.shape_cast %22 : vector<1x8xf32> to vector<1x8x1xf32>
    %24 = tpu.reciprocal %23 {approx = true} : vector<1x8x1xf32> -> vector<1x8x1xf32>
    %25 = vector.broadcast %24 : vector<1x8x1xf32> to vector<1x8x8xf32>
    %26 = arith.mulf %21, %25 : vector<1x8x8xf32>
    %27 = arith.truncf %26 : vector<1x8x8xf32> to vector<1x8x8xbf16>
    "tpu.trace_start"() <{level = 10 : i32, message = "bqk,bkh->bqh"}> : () -> ()
    %cst_8 = arith.constant dense<0.000000e+00> : vector<1x8x128xf32>
    %28 = tpu.matmul %27, %15, %cst_8 {dimension_numbers = #tpu.dot_dimension_numbers<[2], [1], [1], [2], [0, 0, 0, 1, 1, 2], [0], [0]>} : vector<1x8x8xbf16>, vector<1x8x128xbf16>, vector<1x8x128xf32> -> vector<1x8x128xf32>
    "tpu.trace_stop"() : () -> ()
    %29 = vector.shape_cast %28 : vector<1x8x128xf32> to vector<8x128xf32>
    %30 = arith.truncf %29 : vector<8x128xf32> to vector<8x128xbf16>
    %c0_9 = arith.constant 0 : index
    %c0_10 = arith.constant 0 : index
    %31 = vector.load %arg3[%c0_9, %c0_10] : memref<128x128xbf16, #tpu.memory_space<vmem>>, vector<128x128xbf16>
    %cst_11 = arith.constant dense<0.000000e+00> : vector<8x128xf32>
    %32 = tpu.matmul %30, %31, %cst_11 {dimension_numbers = #tpu.dot_dimension_numbers<[1], [0], [0], [1], [0, 0, 1, 1], [], []>} : vector<8x128xbf16>, vector<128x128xbf16>, vector<8x128xf32> -> vector<8x128xf32>
    %c0_12 = arith.constant 0 : index
    %c0_13 = arith.constant 0 : index
    %33 = vector.load %arg5[%c0_12, %c0_13] : memref<1x128xf32, #tpu.memory_space<vmem>>, vector<1x128xf32>
    %34 = vector.broadcast %33 : vector<1x128xf32> to vector<8x128xf32>
    %35 = arith.addf %32, %34 : vector<8x128xf32>
    %c0_14 = arith.constant 0 : index
    %c0_15 = arith.constant 0 : index
    %36 = vector.load %arg6[%c0_14, %c0_15] : memref<8x128xf32, #tpu.memory_space<vmem>>, vector<8x128xf32>
    tpu.vector_store %arg6[%c0_14, %c0_15], %35 {strides = array<i32>} : memref<8x128xf32, #tpu.memory_space<vmem>>, vector<8x128xf32>,
    return
  }
  func.func @transform_0(%arg0: i32) -> (i32, i32) {
    %c0_i32 = arith.constant 0 : i32
    %c0_i32_0 = arith.constant 0 : i32
    return %arg0, %c0_i32 : i32, i32
  }
  func.func @transform_1(%arg0: i32) -> (i32, i32) {
    %c0_i32 = arith.constant 0 : i32
    %c0_i32_0 = arith.constant 0 : i32
    %c0_i32_1 = arith.constant 0 : i32
    return %c0_i32, %c0_i32_0 : i32, i32
  }
  func.func @transform_2(%arg0: i32) -> (i32, i32) {
    %c0_i32 = arith.constant 0 : i32
    %c0_i32_0 = arith.constant 0 : i32
    %c0_i32_1 = arith.constant 0 : i32
    return %c0_i32, %c0_i32_0 : i32, i32
  }
  func.func @transform_3(%arg0: i32) -> (i32, i32) {
    %c0_i32 = arith.constant 0 : i32
    %c0_i32_0 = arith.constant 0 : i32
    %c0_i32_1 = arith.constant 0 : i32
    return %c0_i32, %c0_i32_0 : i32, i32
  }
  func.func @transform_4(%arg0: i32) -> (i32, i32) {
    %c0_i32 = arith.constant 0 : i32
    %c0_i32_0 = arith.constant 0 : i32
    %c0_i32_1 = arith.constant 0 : i32
    return %c0_i32, %c0_i32_0 : i32, i32
  }
  func.func @transform_5(%arg0: i32) -> (i32, i32) {
    %c0_i32 = arith.constant 0 : i32
    %c0_i32_0 = arith.constant 0 : i32
    return %arg0, %c0_i32 : i32, i32
  }
}

</mosaic_0001>

<bundles_post_ra>
// kernel: tpu_custom_call.1
= control target key start
LH: loop header
LB: loop body
LE: loop exit
PB: predicated region body
PF: predicated region fallthrough
CT: control target
= control target key end

     0   :  { %10 = vsyncpa [#allocation3], 0  ;;  %s1414_s0 = inlined_call_operand.hbm [shape: f32[16,128], index: 0, kind: input, shape index: {}]   ;;  %s1415_s1 = inlined_call_operand.hbm [shape: bf16[128,384], index: 1, kind: input, shape index: {}]   ;;  %s1416_s2 = inlined_call_operand.hbm [shape: bf16[128,128], index: 2, kind: input, shape index: {}]   ;;  %s1417_s3 = inlined_call_operand.hbm [shape: f32[1,384], index: 3, kind: input, shape index: {}]   ;;  %s1418_s4 = inlined_call_operand.vmem [shape: f32[1,128], index: 4, kind: input, shape index: {}]   ;;  %s1419_s5 = inlined_call_operand.hbm [shape: f32[16,128], index: 5, kind: output, shape index: {}]  }
   0x1   :  { %12 = vsyncpa [#allocation3 + $0x1], 0 }
   0x2   :  { %13 = vsyncpa [#allocation6], 0 }
   0x3   :  { %14 = vsyncpa [#allocation9], 0 }
   0x4   :  { %15 = vsyncpa [#allocation4], 0 }
   0x5   :  { %17 = vsyncpa [#allocation4 + $0x1], 0  ;;  %s1245_s18 = smov 0   ;;  %s1247_s19 = smov 0  }
   0x6   :  { %s1249_s20 = smov 0   ;;  %s1251_s21 = smov 0  }
   0x7 LB: > { %s175_s24 = sshll.u32 %s1415_s1, 4  ;;  %s1269_s25 = sadd.s32 4294967295, %s1206_s21   ;;  %s1206_s21 = sphi %s1251_s21, %s1430_s21   ;;  %s1202_s20 = sphi %s1249_s20, %s1429_s20   ;;  %s1198_s19 = sphi %s1247_s19, %s1428_s19   ;;  %s1194_s18 = sphi %s1245_s18, %s1427_s18   ;;  %s176_s24 = int_to_ptr.hbm [resolvable:$true] %s175_s24 }
   0x8   : > { %p748_p0 = scmp.ge.s32.totalorder %s1206_s21, 1  ;;  %p44_p1 = scmp.eq.s32.totalorder %s1269_s25, 0 }
   0x9   : > { %p164_p2 = scmp.lt.s32.totalorder %s1206_s21, 3  ;;  %s1208_s27 = smov [#allocation5]  }
   0xa   : > { %s177_s28 = sshll.u32 %s1208_s27, 4  ;;  %s189_s6 = sshll.u32 %s1416_s2, 4  ;;  %s178_s28 = int_to_ptr.vmem [resolvable:$true] %s177_s28  ;;  %s190_s6 = int_to_ptr.hbm [resolvable:$true] %s189_s6 }
   0xb   : > { %p1274_p3 = pnand %p748_p0, %p164_p2  ;;  %s1209_s8 = smov [#allocation7]  }
   0xc   : > { %s191_s9 = sshll.u32 %s1209_s8, 4  ;;  %s1210_s10 = smov 192   ;;  %s192_s9 = int_to_ptr.vmem [resolvable:$true] %s191_s9 }
   0xd   : > { %p942_p4 = pneg %p1274_p3  ;;  %s1211_s11 = smov 12  }
   0xe   : > { %s1212_s12 = smov 64   ;;  %s1213_s13 = smov 4  }
   0xf   : > { %p1286_p6 = pnand %p942_p4, %p44_p1  ;;  %s204_s16 = sshll.u32 %s1417_s3, 4  ;;  %s205_s16 = int_to_ptr.hbm [resolvable:$true] %s204_s16 }
  0x10   : > { %s1214_s17 = smov [#allocation8]   ;;  %s747_s23 = sadd.s32 4294967294, %s1206_s21  }
  0x11   : > { %945 = dma.hbm_to_vmem [thread:$0]  (!%p1286_p6), %s176_s24, 3072, %s178_s28, [#allocation6], %s1210_s10, %s1210_s10, %s1211_s11  }
  0x12   : > { %948 = dma.hbm_to_vmem [thread:$0]  (!%p1286_p6), %s190_s6, 1024, %s192_s9, [#allocation6], %s1212_s12, %s1212_s12, %s1213_s13  }
  0x13   : > { %s206_s22 = sshll.u32 %s1214_s17, 4  ;;  %s1301_s24 = sadd.s32 1, %s1206_s21   ;;  %s207_s22 = int_to_ptr.vmem [resolvable:$true] %s206_s22 }
  0x14   : > { %951 = dma.hbm_to_vmem [thread:$0]  (!%p1286_p6), %s205_s16, 48, %s207_s22, [#allocation9]  }
  0x15   : > { %s30_s27 = sadd.s32 1, %s1202_s20  ;;  %s27_s28 = ssub.s32 %s1206_s21, %s1301_s24 }
  0x16   : > { %p37_p7 = scmp.ne.s32.totalorder %s1202_s20, %s1198_s19  ;;  %p28_p8 = scmp.eq.s32.totalorder %s27_s28, 0 }
  0x17   : > { %p38_p9 = scmp.eq.s32.totalorder %s1206_s21, 0  ;;  %p43_p10 = scmp.ne.s32.totalorder %s1198_s19, %s1194_s18 }
  0x18   : > { %p151_p11 = scmp.eq.s32.totalorder %s1269_s25, 1  ;;  %p157_p0 = scmp.eq.s32.totalorder %s747_s23, 1 }
  0x19   : > { %s1313_s29 = scalar_select %p28_p8, %s1202_s20, %s30_s27  }
  0x1a   : > { %p1317_p12 = por %p44_p1, %p43_p10  ;;  %p1321_p13 = por %p151_p11, %p37_p7 }
  0x1b   : > { %p39_p2 = por %p38_p9, %p37_p7  ;;  %s220_s7 = sand.u32 1, %s1202_s20  }
  0x1c   : > { %p1326_p4 = por %p157_p0, %p43_p10  ;;  %p963_p6 = scmp.lt.s32.totalorder %s1206_s21, 2 }
  0x1d   : > { %s753_s9 = sshll.u32 %s220_s7, 3  ;;  %s754_s10 = sshll.u32 %s1206_s21, 3 }
  0x1e   : > { %s228_s13 = scalar_lea.hbm %s1414_s0, %s754_s10  ;;  %s224_s15 = scalar_lea.vmem [#allocation2], %s753_s9 }
  0x1f   : > { %s230_s14 = sshll.u32 %s228_s13, 4  ;;  %s232_s16 = sshll.u32 %s224_s15, 4  ;;  %s231_s14 = int_to_ptr.hbm [resolvable:$true] %s230_s14  ;;  %s233_s16 = int_to_ptr.vmem [resolvable:$true] %s232_s16 }
  0x20   : > { %p1335_p8 = pnand %p963_p6, %p39_p2  ;;  %s221_s22 = scalar_lea.sflag [#allocation3], %s220_s7 }
  0x21   : > { %s1102_s23 = sshra.s32 %s231_s14, 4  ;;  %s1109_s9 = scalar_lea.hbm %s1414_s0, 16  ;;  %s1103_s23 = int_to_ptr.hbm [resolvable:$true] %s1102_s23 }
  0x22   : > { %s1104_s27 = scalar_lea.hbm %s1103_s23, 8  ;;  %p1106_p9 = pneg %p1335_p8 }
  0x23   : > { %p1105_p7 = scmp.ne.s32.totalorder %s1103_s23, %s1104_s27  ;;  %p1110_p0 = scmp.lt.s32.totalorder %s1103_s23, %s1414_s0 }
  0x24   : > { %p1111_p2 = scmp.lt.s32.totalorder %s1109_s9, %s1104_s27 }
  0x25   : > { %p1107_p10 = pnand %p1106_p9, %p1105_p7 }
  0x26   : > { %p1112_p6 = por %p1111_p2, %p1110_p0 }
  0x27   : > { %p1108_p11 = pneg %p1107_p10 }
  0x29   : > { %p1113_p5 = pnand %p1112_p6, %p1108_p11 }
  0x2b   : > { %1116 = shalt.err (!%p1113_p5)
}
  0x2c   : > { %955 = dma.hbm_to_vmem [thread:$0]  (!%p1335_p8), %s231_s14, 128, %s233_s16, %s221_s22  }
  0x2d   : > { %241 = sbr.rel (%p1274_p3) target bundleno = 882 (0x372), region = 40  ;;  %s1352_s7 = sand.u32 (!%p1274_p3), 1, %s1198_s19  }
  0x2e   : > { %s756_s13 = sshll.u32 (!%p1274_p3), %s1352_s7, 3  ;;  %s244_s15 = scalar_lea.sflag (!%p1274_p3), [#allocation3], %s1352_s7 }
  0x2f   : > { %s1358_s23 = scalar_lea.vmem (!%p1274_p3), [#allocation2], %s756_s13 }
  0x32   : > { %1177 = dma.done.wait (%p1317_p12), %s244_s15, 128  }
  0x33   : > { %1179 = vsyncadd (%p1317_p12), %s244_s15, 4294967168 }
  0x34   : > { %1181 = dma.done.wait (%p44_p1), [#allocation6], 4096  }
  0x35   : > { %1183 = vsyncadd (%p44_p1), [#allocation6], 4294963200 }
  0x36   : > { %1185 = dma.done.wait (%p44_p1), [#allocation9], 48  }
  0x37   : > { %1187 = vsyncadd (%p44_p1), [#allocation9], 4294967248  ;;  %v915_v0 = vld [vmem:[#allocation5 + $0xac] sm:$0xf]  ;;  %v849_v1 = vld [vmem:[#allocation5 + $0xb4] sm:$0xf0] }
  0x38   : > { %v912_v2 = vld [vmem:[#allocation5 + $0x94] sm:$0xf]  ;;  %v852_v3 = vor.u32 %v915_v0, %v849_v1  ;;  %v837_v4 = vld [vmem:[#allocation5 + $0x9c] sm:$0xf0]  ;;  %v847_v5 = vld [vmem:[#allocation5 + $0xa8] sm:$0xf] }
  0x39   : > { %v916_v6 = vld [vmem:[#allocation5 + $0xb0] sm:$0xf0]  ;;  %v835_v8 = vld [vmem:[#allocation5 + $0x90] sm:$0xf]  ;;  %v840_v9 = vor.u32 %v912_v2, %v837_v4  ;;  %v913_v10 = vld [vmem:[#allocation5 + $0x98] sm:$0xf0] }
  0x3a   : > { %v848_v7 = vor.u32 %v916_v6, %v847_v5  ;;  %474 = vmatpush.bf16.msra.mxu1 %v852_v3  ;;  %v909_v11 = vld [vmem:[#allocation5 + $0x7c] sm:$0xf]  ;;  %v825_v12 = vld [vmem:[#allocation5 + $0x84] sm:$0xf0]  ;;  %v836_v13 = vor.u32 %v913_v10, %v835_v8  ;;  %v823_v14 = vld [vmem:[#allocation5 + $0x78] sm:$0xf] }
  0x3b   : > { %v910_v15 = vld [vmem:[#allocation5 + $0x80] sm:$0xf0]  ;;  %v828_v16 = vor.u32 %v909_v11, %v825_v12  ;;  %v813_v18 = vld [vmem:[#allocation5 + $0x6c] sm:$0xf0]  ;;  %v811_v20 = vld [vmem:[#allocation5 + $0x60] sm:$0xf] }
  0x3c   : > { %461 = vmatpush.bf16.msra.mxu0 %v848_v7  ;;  %v906_v17 = vld [vmem:[#allocation5 + $0x64] sm:$0xf]  ;;  %v824_v19 = vor.u32 %v910_v15, %v823_v14  ;;  %v907_v21 = vld [vmem:[#allocation5 + $0x68] sm:$0xf0]  ;;  %v801_v24 = vld [vmem:[#allocation5 + $0x54] sm:$0xf0] }
  0x3d   : > { %v816_v22 = vor.u32 %v906_v17, %v813_v18  ;;  %v903_v23 = vld [vmem:[#allocation5 + $0x4c] sm:$0xf]  ;;  %v812_v25 = vor.u32 %v907_v21, %v811_v20  ;;  %v799_v26 = vld [vmem:[#allocation5 + $0x48] sm:$0xf]  ;;  %v904_v27 = vld [vmem:[#allocation5 + $0x50] sm:$0xf0] }
  0x3e   : > { %475 = vmatpush.bf16.msra.mxu1 %v840_v9  ;;  %v804_v28 = vor.u32 %v903_v23, %v801_v24  ;;  %v900_v29 = vld [vmem:[#allocation5 + $0x34] sm:$0xf]  ;;  %v789_v30 = vld [vmem:[#allocation5 + $0x3c] sm:$0xf0]  ;;  %v800_v31 = vor.u32 %v904_v27, %v799_v26  ;;  %v787_v32 = vld [vmem:[#allocation5 + $0x30] sm:$0xf] }
  0x3f   : > { %v901_v33 = vld [vmem:[#allocation5 + $0x38] sm:$0xf0]  ;;  %v792_v34 = vor.u32 %v900_v29, %v789_v30  ;;  %v777_v36 = vld [vmem:[#allocation5 + $0x24] sm:$0xf0]  ;;  %v775_v38 = vld [vmem:[#allocation5 + $0x18] sm:$0xf] }
  0x40   : > { %462 = vmatpush.bf16.msra.mxu0 %v836_v13  ;;  %v897_v35 = vld [vmem:[#allocation5 + $0x1c] sm:$0xf]  ;;  %v788_v37 = vor.u32 %v901_v33, %v787_v32  ;;  %v898_v39 = vld [vmem:[#allocation5 + $0x20] sm:$0xf0]  ;;  %v765_v42 = vld [vmem:[#allocation5 + $0xc] sm:$0xf0] }
  0x41   : > { %v780_v40 = vor.u32 %v897_v35, %v777_v36  ;;  %v894_v41 = vld [vmem:[#allocation5 + $0x4] sm:$0xf]  ;;  %v776_v43 = vor.u32 %v898_v39, %v775_v38  ;;  %v763_v44 = vld [vmem:[#allocation5] sm:$0xf]  ;;  %v895_v45 = vld [vmem:[#allocation5 + $0x8] sm:$0xf0] }
  0x42   : > { %476 = vmatpush.bf16.msra.mxu1 %v828_v16  ;;  %v768_v46 = vor.u32 %v894_v41, %v765_v42  ;;  %v291_v47 = vld [vmem:[%s1358_s23] sm:$0xff]  ;;  %v764_v48 = vor.u32 %v895_v45, %v763_v44  ;;  %v325_v50 = vld [vmem:[#allocation8] sm:$0x7]  ;;  %v914_v1 = vld [vmem:[#allocation5 + $0xa0] sm:$0xf0]  ;;  %vm516_vm0 = vcmask 64512  }
  0x43   : > { %v292_v49 = vpack.c.bf16 %v291_v47, %v291_v47  ;;  %v328_v51 = vperm.slane %v325_v50, 1  ;;  %v327_v53 = vperm.slane %v325_v50, 0  ;;  %v855_v61 = vld [vmem:[#allocation5 + $0xb0] sm:$0xf]  ;;  %v917_v62 = vld [vmem:[#allocation5 + $0xb8] sm:$0xf0] }
  0x44   : > { %463 = vmatpush.bf16.msra.mxu0 %v824_v19  ;;  %v843_v63 = vld [vmem:[#allocation5 + $0x98] sm:$0xf]  ;;  %v856_v0 = vor.u32 %v917_v62, %v855_v61  ;;  %v831_v3 = vld [vmem:[#allocation5 + $0x80] sm:$0xf]  ;;  %v911_v4 = vld [vmem:[#allocation5 + $0x88] sm:$0xf0] }
  0x45   : > { %v844_v2 = vor.u32 %v914_v1, %v843_v63  ;;  %v832_v5 = vor.u32 %v911_v4, %v831_v3  ;;  %v819_v6 = vld [vmem:[#allocation5 + $0x68] sm:$0xf]  ;;  %v908_v7 = vld [vmem:[#allocation5 + $0x70] sm:$0xf0]  ;;  %v807_v9 = vld [vmem:[#allocation5 + $0x50] sm:$0xf] }
  0x46   : > { %477 = vmatpush.bf16.msra.mxu1 %v816_v22  ;;  %487 = vmatpush.bf16.msra.mxu2 %v856_v0  ;;  %v820_v8 = vor.u32 %v908_v7, %v819_v6  ;;  %v905_v10 = vld [vmem:[#allocation5 + $0x58] sm:$0xf0]  ;;  %v795_v12 = vld [vmem:[#allocation5 + $0x38] sm:$0xf]  ;;  %v902_v13 = vld [vmem:[#allocation5 + $0x40] sm:$0xf0] }
  0x47   : > { %v808_v11 = vor.u32 %v905_v10, %v807_v9  ;;  %v796_v14 = vor.u32 %v902_v13, %v795_v12  ;;  %v783_v15 = vld [vmem:[#allocation5 + $0x20] sm:$0xf]  ;;  %v899_v16 = vld [vmem:[#allocation5 + $0x28] sm:$0xf0]  ;;  %v771_v19 = vld [vmem:[#allocation5 + $0x8] sm:$0xf] }
  0x48   : > { %464 = vmatpush.bf16.msra.mxu0 %v812_v25  ;;  %v784_v17 = vor.u32 %v899_v16, %v783_v15  ;;  %v896_v20 = vld [vmem:[#allocation5 + $0x10] sm:$0xf0]  ;;  %v329_v30 = vperm.slane %v325_v50, 2  ;;  %vm532_vm1 = vcmask 1043456   ;;  %v925_v35 = vld [vmem:[#allocation7 + $0x38] sm:$0xff]  ;;  %v922_v38 = vld [vmem:[#allocation7 + $0x20] sm:$0xff] }
  0x49   : > { %v772_v22 = vor.u32 %v896_v20, %v771_v19  ;;  %v924_v36 = vld [vmem:[#allocation7 + $0x30] sm:$0xff]  ;;  %v921_v39 = vld [vmem:[#allocation7 + $0x18] sm:$0xff]  ;;  %v919_v42 = vld [vmem:[#allocation7 + $0x8] sm:$0xff]  ;;  %s891_s26 = sshll.u32 %s1269_s25, 3  ;;  %s289_s27 = scalar_lea.vmem [#allocation10], %s756_s13 }
  0x4a   : > { %478 = vmatpush.bf16.msra.mxu1 %v804_v28  ;;  %488 = vmatpush.bf16.msra.mxu2 %v844_v2  ;;  %s643_s16 = scalar_lea.hbm %s1419_s5, %s891_s26  ;;  %v1007_v50 = vld [vmem:[%s1418_s4] ss:$0 sm:$0xff]  ;;  %s645_s28 = sshll.u32 %s289_s27, 4  ;;  %s646_s28 = int_to_ptr.vmem [resolvable:$true] %s645_s28 }
  0x4b   : > { %s647_s10 = sshll.u32 %s643_s16, 4  ;;  %s633_s9 = scalar_lea.sflag [#allocation4], %s1352_s7  ;;  %s648_s10 = int_to_ptr.hbm [resolvable:$true] %s647_s10 }
  0x4c   : > { %465 = vmatpush.bf16.msra.mxu0 %v800_v31  ;;  %s1146_s25 = sshra.s32 %s648_s10, 4  ;;  %s1152_s23 = scalar_lea.hbm %s1419_s5, 16  ;;  %s1147_s25 = int_to_ptr.hbm [resolvable:$true] %s1146_s25 }
  0x4d   : > { %s1148_s11 = scalar_lea.hbm %s1147_s25, 8  ;;  %p1153_p12 = scmp.lt.s32.totalorder %s1147_s25, %s1419_s5 }
  0x4e   : > { %479 = vmatpush.bf16.msra.mxu1 %v792_v34  ;;  %489 = vmatpush.bf16.msra.mxu2 %v832_v5  ;;  %p1149_p1 = scmp.ne.s32.totalorder %s1147_s25, %s1148_s11  ;;  %p1154_p8 = scmp.lt.s32.totalorder %s1152_s23, %s1148_s11 }
  0x50   : > { %466 = vmatpush.bf16.msra.mxu0 %v788_v37  ;;  %v923_v37 = vld [vmem:[#allocation7 + $0x28] sm:$0xff]  ;;  %p1150_p3 = pnand %p1149_p1, %p1321_p13  ;;  %p1155_p7 = por %p1154_p8, %p1153_p12 }
  0x52   : > { %480 = vmatpush.bf16.msra.mxu1 %v780_v40  ;;  %490 = vmatpush.bf16.msra.mxu2 %v820_v8  ;;  %v920_v40 = vld [vmem:[#allocation7 + $0x10] sm:$0xff]  ;;  %p1151_p5 = pneg %p1150_p3 }
  0x54   : > { %467 = vmatpush.bf16.msra.mxu0 %v776_v43  ;;  %p1156_p9 = pnand %p1155_p7, %p1151_p5 }
  0x56   : > { %481 = vmatpush.bf16.msra.mxu1 %v768_v46  ;;  %491 = vmatpush.bf16.msra.mxu2 %v808_v11  ;;  %v918_v46 = vld [vmem:[#allocation7] sm:$0xff] }
  0x58   : > { %468 = vmatpush.bf16.msra.mxu0 %v764_v48 }
  0x59   : > { %482 = vmatmul.bf16.vlgmr.msra.gmra.mxu1 %v292_v49 }
  0x5a   : > { %492 = vmatpush.bf16.msra.mxu2 %v796_v14 }
  0x5b   : > { %469 = vmatmul.bf16.vlgmr.msra.gmra.mxu0 %v292_v49 }
  0x5e   : > { %493 = vmatpush.bf16.msra.mxu2 %v784_v17 }
  0x62   : > { %494 = vmatpush.bf16.msra.mxu2 %v772_v22 }
  0x65   : > { %495 = vmatmul.bf16.vlgmr.msra.gmra.mxu2 %v292_v49 }
  0xd6   : > { %v483_v52 = vpop.f32.mrf.mxu1 }
  0xd7   : > { %v484_v54 = vadd.f32 %v483_v52, %v328_v51 }
  0xd8   : > { %v470_v55 = vpop.f32.mrf.mxu0 }
  0xd9   : > { %v501_v56 = vpack.c.bf16 %v484_v54, %v484_v54  ;;  %v471_v57 = vadd.f32 %v470_v55, %v327_v53 }
  0xdb   : > { %510 = vmatpush.bf16.xpose.msrb.mxu0 %v501_v56  ;;  %v500_v58 = vpack.c.bf16 %v471_v57, %v471_v57 }
  0xde   : > { %v485_v59 = vpop.f32.mrf.mxu1 }
  0xe0   : > { %v472_v60 = vpop.f32.mrf.mxu0 }
  0xe2   : > { %511 = vmatmul.bf16.vlgmr.msrb.gmra.mxu0 %v500_v58 }
  0xe8   : > { %v496_v29 = vpop.f32.mrf.mxu2 }
  0xe9   : > { %v497_v31 = vadd.f32 %v496_v29, %v329_v30 }
  0xeb   : > { %v502_v33 = vpack.c.bf16 %v497_v31, %v497_v31 }
  0xed   : > { %v534_v34 = vsel %vm532_vm1, %v502_v33, 0 }
  0xee   : > { %543 = vmatpush.bf16.msra.mxu3 %v534_v34 }
  0xf0   : > { %v498_v32 = vpop.f32.mrf.mxu2 }
  0xf2   : > { %618 = vmatpush.bf16.msrb.mxu3 %v925_v35 }
  0xf6   : > { %619 = vmatpush.bf16.msrb.mxu3 %v924_v36 }
  0xfa   : > { %620 = vmatpush.bf16.msrb.mxu3 %v923_v37 }
  0xfe   : > { %621 = vmatpush.bf16.msrb.mxu3 %v922_v38 }
 0x102   : > { %622 = vmatpush.bf16.msrb.mxu3 %v921_v39 }
 0x106   : > { %623 = vmatpush.bf16.msrb.mxu3 %v920_v40 }
 0x10a   : > { %624 = vmatpush.bf16.msrb.mxu3 %v919_v42 }
 0x10e   : > { %625 = vmatpush.bf16.msrb.mxu3 %v918_v46 }
 0x15f   : > { %v512_v18 = vpop.f32.mrf.mxu0 }
 0x160   : > { %v517_v21 = vsel %vm516_vm0, %v512_v18, -inf }
 0x161   : > { %518 = vmax.xlane.f32.xlu0 %v517_v21 }
 0x167   : > { %v514_v23 = vpop.f32.mrf.mxu0 }
 0x1d4   : > { %v519_v24 = vpop.xlane.xlu0 %518 }
 0x1d5   : > { %v520_v25 = vsub.f32 %v512_v18, %v519_v24 }
 0x1d7   : > { %v521_v26 = vmul.f32 1.442695, %v520_v25 }
 0x1d9   : > { %1008 = vpow2.f32 %v521_v26 }
 0x1df   : > { %v1009_v27 = vpop.eup %1008 }
 0x1e0   : > { %v523_v28 = vsel %vm516_vm0, %v1009_v27, 0.0 }
 0x1e1   : > { %524 = vadd.xlane.f32.xlu0 %v523_v28 }
 0x254   : > { %v525_v41 = vpop.xlane.xlu0 %524 }
 0x255   : > { %1010 = vrcp.f32 %v525_v41 }
 0x25b   : > { %v1011_v43 = vpop.eup %1010 }
 0x25c   : > { %v527_v44 = vmul.f32 %v1011_v43, %v1009_v27 }
 0x25e   : > { %v528_v45 = vpack.c.bf16 %v527_v44, %v527_v44 }
 0x260   : > { %857 = vmatmul.msk.bf16.vlgmr.msra.gmra.mxu3 %vm516_vm0, %v528_v45 }
 0x2e3   : > { %v545_v47 = vpop.f32.mrf.mxu3 }
 0x2e4   : > { %v549_v48 = vpack.c.bf16 %v545_v47, %v545_v47 }
 0x2e6   : > { %626 = vmatmul.bf16.vlgmr.msrb.gmra.mxu3 %v549_v48 }
 0x2eb   : > { %v547_v49 = vpop.f32.mrf.mxu3 }
 0x369   : > { %v627_v51 = vpop.f32.mrf.mxu3 }
 0x36a   : > { %v628_v52 = vadd.f32 %v1007_v50, %v627_v51 }
 0x36c   : > { %631 = vst [vmem:[%s289_s27] sm:$0xff] %v628_v52 }
 0x36d   : > { %1159 = shalt.err (!%p1156_p9)
}
 0x36e   : > { %940 = dma.vmem_to_hbm [thread:$0]  (%p1321_p13), %s646_s28, 128, %s648_s10, %s633_s9  }
 0x371   : > { %v629_v53 = vpop.f32.mrf.mxu3 }
 0x372 PF: > { %s659_s7 = sand.u32 1, %s1194_s18   ;;  %p1426_p10 = scmp.ge.s32.totalorder %s1206_s21, 2 }
 0x373   : > { %s660_s30 = scalar_lea.sflag [#allocation4], %s659_s7 }
 0x374   : > { %p957_p11 = pnand %p1426_p10, %p1326_p4 }
 0x376   : > { %p958_p0 = pneg %p957_p11 }
 0x378   : > { %1189 = dma.done.wait (%p958_p0), %s660_s30, 128  }
 0x379   : > { %1191 = vsyncadd (%p958_p0), %s660_s30, 4294967168  ;;  %p20_p2 = scmp.ge.s32.totalorder %s1301_s24, 4   ;;  %s1427_s18 = smov %s1198_s19 }
 0x37a   : > { %s1428_s19 = smov %s1202_s20  ;;  %s1429_s20 = smov %s1313_s29 }
 0x37b   : > { %s1430_s21 = smov %s1301_s24  ;;  %22 = sbr.rel (!%p20_p2) target bundleno = 7 (0x7), region = 97 }
 0x380   :  { %666 = vsyncpa [#allocation3], 1 }
 0x381   :  { %668 = vsyncpa [#allocation3 + $0x1], 1 }
 0x382   :  { %669 = vsyncpa [#allocation6], 1 }
 0x383   :  { %670 = vsyncpa [#allocation9], 1 }
 0x384   :  { %671 = vsyncpa [#allocation4], 1 }
 0x385   :  { %673 = vsyncpa [#allocation4 + $0x1], 1 }

</bundles_post_ra>
